<compile_context>
chip_gen: v7x
topology: tpu7x:2x2x1
jax: 0.10.0
libtpu: 0.0.40
codegen_flags: <defaults>
</compile_context>

<pallas_src>
import jax
import jax.numpy as jnp
from jax.experimental import pallas as pl
from jax.experimental.pallas import tpu as pltpu


def classifier_kernel(x_ref, w1_ref, b1_ref, w2_ref, b2_ref, w3_ref, b3_ref, o_ref):
    # x arrives f32 straight from HBM; cast to the MXU compute dtype here
    # (VPU op, fully hidden under the x DMA).
    x = x_ref[...].astype(w1_ref.dtype)                                  # (TB, 2D)

    # linear1: (TB, 2D) @ (2D, D) -> f32 acc, + bias, relu  (dropout = identity)
    h1 = jnp.dot(x, w1_ref[...], preferred_element_type=jnp.float32) + b1_ref[...]
    h1 = jnp.maximum(h1, 0.0)

    # linear2: (TB, D) @ (D, D) -> f32 acc, + bias, relu    (dropout = identity)
    h2 = jnp.dot(h1.astype(w2_ref.dtype), w2_ref[...],
                 preferred_element_type=jnp.float32) + b2_ref[...]
    h2 = jnp.maximum(h2, 0.0)

    # linear3 (out_features = 1): VPU broadcast-multiply + cross-lane sum
    # instead of a degenerate (D, 1) MXU matmul.
    w3_row = w3_ref[...].astype(jnp.float32)                             # (1, D)
    out = jnp.sum(h2 * w3_row, axis=-1) + b3_ref[0, 0]                   # (TB,)

    # Lane-dense store: one contiguous (1, TB) row per grid step.
    o_ref[...] = out.reshape(o_ref.shape).astype(o_ref.dtype)


def _pick_tile_b(B, cap=4096):
    """Batch tile: the kernel is HBM-bound, so bigger tiles amortize the
    ~0.35us per-grid-step overhead.  Small batches (B <= cap) run as a single
    grid step; larger batches use the biggest multiple-of-8 divisor <= cap
    (which also guarantees >= 2 steps for megacore sharding on v7x)."""
    if B <= cap:
        return B
    best = None
    t = 8
    while t <= cap:
        if B % t == 0:
            best = t
        t += 8
    # Fallback: no clean divisor -- run the whole batch in one step.
    return best if best is not None else B


def prepare_params(params, compute_dtype=jnp.bfloat16):
    """One-time conversion of PyTorch-convention params ((out,in) weights) to
    the kernel-ready layout.  Call once outside the hot loop."""
    w1, b1, w2, b2, w3, b3 = params
    D = w1.shape[0]
    w1t = jnp.transpose(w1).astype(compute_dtype)        # (2D, D)
    w2t = jnp.transpose(w2).astype(compute_dtype)        # (D, D)
    w3r = w3.reshape(1, D).astype(compute_dtype)         # (1, D) row for VPU reduce
    b1r = b1.reshape(1, D).astype(jnp.float32)
    b2r = b2.reshape(1, D).astype(jnp.float32)
    b3s = b3.reshape(1, 1).astype(jnp.float32)            # SMEM scalar
    return w1t, b1r, w2t, b2r, w3r, b3s


def classifier_forward(x, prepared_params, *, tile_b=None):
    """x: (B, 2*input_dim) float32 -> (B, 1) float32."""
    w1t, b1r, w2t, b2r, w3r, b3s = prepared_params
    B, in2 = x.shape
    D = w1t.shape[1]
    assert in2 == 2 * D

    if tile_b is None:
        tile_b = _pick_tile_b(B)
    assert B % tile_b == 0
    assert tile_b == B or tile_b % 8 == 0, "tile_b must be a multiple of 8 (or == B)"
    num_tiles = B // tile_b
    grid = (num_tiles,)

    full = lambda i: (0, 0)  # weights / bias rows resident across all batch tiles

    w_itemsize = jnp.dtype(w1t.dtype).itemsize
    flops = 2 * B * (2 * D * D + D * D + D)
    bytes_accessed = (B * 2 * D * 4                              # streamed f32 x
                      + (2 * D * D + D * D + D) * w_itemsize     # resident weights
                      + (2 * D + 1) * 4                          # biases (f32)
                      + B * 4)                                   # output

    # v5e's default scoped VMEM is 16 MiB; give explicit headroom for the
    # f32 intermediates of large batch tiles (lane-padded to 128).
    vmem_limit = 32 * 1024 * 1024 if tile_b >= 2048 else None

    out2d = pl.pallas_call(
        classifier_kernel,
        out_shape=jax.ShapeDtypeStruct((num_tiles, tile_b), jnp.float32),
        grid_spec=pltpu.PrefetchScalarGridSpec(
            num_scalar_prefetch=0,
            grid=grid,
            in_specs=[
                pl.BlockSpec((tile_b, 2 * D), lambda i: (i, 0)),    # x (streamed, f32)
                pl.BlockSpec((2 * D, D), full),                     # w1t (resident)
                pl.BlockSpec((1, D), full),                         # b1
                pl.BlockSpec((D, D), full),                         # w2t (resident)
                pl.BlockSpec((1, D), full),                         # b2
                pl.BlockSpec((1, D), full),                         # w3 row
                pl.BlockSpec(memory_space=pltpu.MemorySpace.SMEM),  # b3 scalar
            ],
            out_specs=pl.BlockSpec((1, tile_b), lambda i: (i, 0)),  # lane-dense
        ),
        compiler_params=pltpu.CompilerParams(
            dimension_semantics=("parallel",),
            vmem_limit_bytes=vmem_limit),
        cost_estimate=pl.CostEstimate(
            flops=flops, transcendentals=0, bytes_accessed=bytes_accessed),
    )(x, w1t, b1r, w2t, b2r, w3r, b3s)

    return out2d.reshape(B, 1)


def init_params(key, input_dim):
    """Deterministic synthetic params, PyTorch Linear shapes (out, in)."""
    k1, k2, k3, k4, k5, k6 = jax.random.split(key, 6)
    scale1 = 1.0 / jnp.sqrt(2.0 * input_dim)
    scale2 = 1.0 / jnp.sqrt(1.0 * input_dim)
    w1 = jax.random.uniform(k1, (input_dim, 2 * input_dim), jnp.float32, -scale1, scale1)
    b1 = jax.random.uniform(k2, (input_dim,), jnp.float32, -scale1, scale1)
    w2 = jax.random.uniform(k3, (input_dim, input_dim), jnp.float32, -scale2, scale2)
    b2 = jax.random.uniform(k4, (input_dim,), jnp.float32, -scale2, scale2)
    w3 = jax.random.uniform(k5, (1, input_dim), jnp.float32, -scale2, scale2)
    b3 = jax.random.uniform(k6, (1,), jnp.float32, -scale2, scale2)
    return w1, b1, w2, b2, w3, b3


def reference_forward(x, params):
    w1, b1, w2, b2, w3, b3 = params
    h1 = jnp.maximum(x @ w1.T + b1, 0.0)   # dropout is identity in eval
    h2 = jnp.maximum(h1 @ w2.T + b2, 0.0)
    return h2 @ w3.T + b3


if __name__ == "__main__":
    key = jax.random.PRNGKey(0)
    input_dim = 32
    batch = 32   # small batch -> single grid step (no forced splitting)

    kx, kp = jax.random.split(key)
    x = jax.random.normal(kx, (batch, 2 * input_dim), jnp.float32)
    params = init_params(kp, input_dim)

    # One-time, out-of-hot-loop weight prep; jitted forward takes prepared params.
    prepared = jax.tree_util.tree_map(jax.block_until_ready, prepare_params(params))

    fwd = jax.jit(classifier_forward)
    out = fwd(x, prepared)
    out = jax.block_until_ready(out)

    ref = reference_forward(x, params)
    assert out.shape == (batch, 1)
    # bf16 MXU operands with f32 accumulation: loose-but-meaningful tolerance
    # against the pure-f32 reference.
    assert jnp.allclose(out, ref, atol=5e-2, rtol=5e-2), "mismatch vs reference"

    print("KERNEL_OK")
</pallas_src>

<mosaic_0001>
module attributes {stable_mosaic.version = 11 : i64} {
  func.func @classifier_kernel(%arg0: i32, %arg1: memref<32x64xf32, #tpu.memory_space<vmem>>, %arg2: memref<64x32xbf16, #tpu.memory_space<vmem>>, %arg3: memref<1x32xf32, #tpu.memory_space<vmem>>, %arg4: memref<32x32xbf16, #tpu.memory_space<vmem>>, %arg5: memref<1x32xf32, #tpu.memory_space<vmem>>, %arg6: memref<1x32xbf16, #tpu.memory_space<vmem>>, %arg7: memref<1x1xf32, #tpu.memory_space<smem>>, %arg8: memref<1x32xf32, #tpu.memory_space<vmem>>) attributes {dimension_semantics = [#tpu.dimension_semantics<parallel>], iteration_bounds = array<i64: 1>, scalar_prefetch = 0 : i64, scratch_operands = 0 : i64, tpu.core_type = #tpu.core_type<tc>, window_params = [{transform_indices = @transform_0, window_bounds = array<i64: 32, 64>}, {pipeline_mode = #tpu.pipeline_mode<synchronous>, transform_indices = @transform_1, window_bounds = array<i64: 64, 32>}, {pipeline_mode = #tpu.pipeline_mode<synchronous>, transform_indices = @transform_2, window_bounds = array<i64: 1, 32>}, {pipeline_mode = #tpu.pipeline_mode<synchronous>, transform_indices = @transform_3, window_bounds = array<i64: 32, 32>}, {pipeline_mode = #tpu.pipeline_mode<synchronous>, transform_indices = @transform_4, window_bounds = array<i64: 1, 32>}, {pipeline_mode = #tpu.pipeline_mode<synchronous>, transform_indices = @transform_5, window_bounds = array<i64: 1, 32>}, {transform_indices = @transform_6, window_bounds = array<i64: 1, 1>}, {transform_indices = @transform_7, window_bounds = array<i64: 1, 32>}]} {
    %c0 = arith.constant 0 : index
    %c0_0 = arith.constant 0 : index
    %0 = vector.load %arg1[%c0, %c0_0] : memref<32x64xf32, #tpu.memory_space<vmem>>, vector<32x64xf32>
    %1 = arith.truncf %0 : vector<32x64xf32> to vector<32x64xbf16>
    %c0_1 = arith.constant 0 : index
    %c0_2 = arith.constant 0 : index
    %2 = vector.load %arg2[%c0_1, %c0_2] : memref<64x32xbf16, #tpu.memory_space<vmem>>, vector<64x32xbf16>
    %cst = arith.constant dense<0.000000e+00> : vector<32x32xf32>
    %3 = tpu.matmul %1, %2, %cst {dimension_numbers = #tpu.dot_dimension_numbers<[1], [0], [0], [1], [0, 0, 1, 1], [], []>} : vector<32x64xbf16>, vector<64x32xbf16>, vector<32x32xf32> -> vector<32x32xf32>
    %c0_3 = arith.constant 0 : index
    %c0_4 = arith.constant 0 : index
    %4 = vector.load %arg3[%c0_3, %c0_4] : memref<1x32xf32, #tpu.memory_space<vmem>>, vector<1x32xf32>
    %5 = vector.broadcast %4 : vector<1x32xf32> to vector<32x32xf32>
    %6 = arith.addf %3, %5 : vector<32x32xf32>
    %cst_5 = arith.constant 0.000000e+00 : f32
    %7 = vector.broadcast %cst_5 : f32 to vector<32x32xf32>
    %8 = arith.maximumf %6, %7 : vector<32x32xf32>
    %9 = arith.truncf %8 : vector<32x32xf32> to vector<32x32xbf16>
    %c0_6 = arith.constant 0 : index
    %c0_7 = arith.constant 0 : index
    %10 = vector.load %arg4[%c0_6, %c0_7] : memref<32x32xbf16, #tpu.memory_space<vmem>>, vector<32x32xbf16>
    %cst_8 = arith.constant dense<0.000000e+00> : vector<32x32xf32>
    %11 = tpu.matmul %9, %10, %cst_8 {dimension_numbers = #tpu.dot_dimension_numbers<[1], [0], [0], [1], [0, 0, 1, 1], [], []>} : vector<32x32xbf16>, vector<32x32xbf16>, vector<32x32xf32> -> vector<32x32xf32>
    %c0_9 = arith.constant 0 : index
    %c0_10 = arith.constant 0 : index
    %12 = vector.load %arg5[%c0_9, %c0_10] : memref<1x32xf32, #tpu.memory_space<vmem>>, vector<1x32xf32>
    %13 = vector.broadcast %12 : vector<1x32xf32> to vector<32x32xf32>
    %14 = arith.addf %11, %13 : vector<32x32xf32>
    %cst_11 = arith.constant 0.000000e+00 : f32
    %15 = vector.broadcast %cst_11 : f32 to vector<32x32xf32>
    %16 = arith.maximumf %14, %15 : vector<32x32xf32>
    %c0_12 = arith.constant 0 : index
    %c0_13 = arith.constant 0 : index
    %17 = vector.load %arg6[%c0_12, %c0_13] : memref<1x32xbf16, #tpu.memory_space<vmem>>, vector<1x32xbf16>
    %18 = arith.extf %17 : vector<1x32xbf16> to vector<1x32xf32>
    %19 = vector.broadcast %18 : vector<1x32xf32> to vector<32x32xf32>
    %20 = arith.mulf %16, %19 : vector<32x32xf32>
    %cst_14 = arith.constant dense<0.000000e+00> : vector<32xf32>
    %21 = vector.multi_reduction <add>, %20, %cst_14 [1] : vector<32x32xf32> to vector<32xf32>
    %c0_15 = arith.constant 0 : index
    %c0_16 = arith.constant 0 : index
    %22 = memref.load %arg7[%c0_15, %c0_16] : memref<1x1xf32, #tpu.memory_space<smem>>
    %23 = vector.broadcast %22 : f32 to vector<32xf32>
    %24 = arith.addf %21, %23 : vector<32xf32>
    %25 = vector.shape_cast %24 : vector<32xf32> to vector<1x32xf32>
    %c0_17 = arith.constant 0 : index
    %c0_18 = arith.constant 0 : index
    %26 = vector.load %arg8[%c0_17, %c0_18] : memref<1x32xf32, #tpu.memory_space<vmem>>, vector<1x32xf32>
    tpu.vector_store %arg8[%c0_17, %c0_18], %25 {strides = array<i32>} : memref<1x32xf32, #tpu.memory_space<vmem>>, vector<1x32xf32>,
    return
  }
  func.func @transform_0(%arg0: i32) -> (i32, i32) {
    %c0_i32 = arith.constant 0 : i32
    %c0_i32_0 = arith.constant 0 : i32
    return %arg0, %c0_i32 : i32, i32
  }
  func.func @transform_1(%arg0: i32) -> (i32, i32) {
    %c0_i32 = arith.constant 0 : i32
    %c0_i32_0 = arith.constant 0 : i32
    %c0_i32_1 = arith.constant 0 : i32
    return %c0_i32, %c0_i32_0 : i32, i32
  }
  func.func @transform_2(%arg0: i32) -> (i32, i32) {
    %c0_i32 = arith.constant 0 : i32
    %c0_i32_0 = arith.constant 0 : i32
    %c0_i32_1 = arith.constant 0 : i32
    return %c0_i32, %c0_i32_0 : i32, i32
  }
  func.func @transform_3(%arg0: i32) -> (i32, i32) {
    %c0_i32 = arith.constant 0 : i32
    %c0_i32_0 = arith.constant 0 : i32
    %c0_i32_1 = arith.constant 0 : i32
    return %c0_i32, %c0_i32_0 : i32, i32
  }
  func.func @transform_4(%arg0: i32) -> (i32, i32) {
    %c0_i32 = arith.constant 0 : i32
    %c0_i32_0 = arith.constant 0 : i32
    %c0_i32_1 = arith.constant 0 : i32
    return %c0_i32, %c0_i32_0 : i32, i32
  }
  func.func @transform_5(%arg0: i32) -> (i32, i32) {
    %c0_i32 = arith.constant 0 : i32
    %c0_i32_0 = arith.constant 0 : i32
    %c0_i32_1 = arith.constant 0 : i32
    return %c0_i32, %c0_i32_0 : i32, i32
  }
  func.func @transform_6(%arg0: i32) -> (i32, i32) {
    %c0_i32 = arith.constant 0 : i32
    %c0_i32_0 = arith.constant 0 : i32
    %c0_i32_1 = arith.constant 0 : i32
    return %c0_i32, %c0_i32_0 : i32, i32
  }
  func.func @transform_7(%arg0: i32) -> (i32, i32) {
    %c0_i32 = arith.constant 0 : i32
    %c0_i32_0 = arith.constant 0 : i32
    return %arg0, %c0_i32 : i32, i32
  }
}

</mosaic_0001>

<bundles_post_ra>
// kernel: classifier_forward.1
= control target key start
LH: loop header
LB: loop body
LE: loop exit
PB: predicated region body
PF: predicated region fallthrough
CT: control target
= control target key end

     0   :  { %vm74_vm0 = vcmask 523264   ;;  %s469_s0 = inlined_call_operand.vmem [shape: f32[32,64], index: 0, kind: input, shape index: {}]   ;;  %s470_s1 = inlined_call_operand.vmem [shape: bf16[64,32], index: 1, kind: input, shape index: {}]   ;;  %s471_s2 = inlined_call_operand.vmem [shape: f32[1,32], index: 2, kind: input, shape index: {}]   ;;  %s472_s3 = inlined_call_operand.vmem [shape: bf16[32,32], index: 3, kind: input, shape index: {}]   ;;  %s473_s4 = inlined_call_operand.vmem [shape: f32[1,32], index: 4, kind: input, shape index: {}]   ;;  %s474_s5 = inlined_call_operand.vmem [shape: bf16[1,32], index: 5, kind: input, shape index: {}]   ;;  %s475_s6 = inlined_call_operand.<no memory space> [shape: f32[1,1], index: 6, kind: input, shape index: {}]   ;;  %s476_s7 = inlined_call_operand.hbm [shape: f32[1,32], index: 7, kind: output, shape index: {}]  }
   0x1   :  { %v338_v0 = vld [vmem:[%s470_s1] sm:$0xff]   ;;  %v339_v1 = vld [vmem:[%s470_s1 + $0x8] sm:$0xff]   ;;  %v340_v2 = vld [vmem:[%s470_s1 + $0x10] sm:$0xff]  }
   0x2   :  { %317 = vmatprep.subr.bf16.mxu0 %v338_v0  ;;  %v29_v3 = vld [vmem:[%s469_s0] sm:$0xff]  ;;  %v30_v4 = vld [vmem:[%s469_s0 + $0x8] sm:$0xff] }
   0x3   :  { %318 = vmatpush3.bf16.msra.mxu0 %v338_v0  ;;  %v33_v5 = vpack.c.bf16 %v30_v4, %v29_v3 }
   0x4   :  { %319 = vmatprep.subr.bf16.mxu0 %v339_v1 }
   0x5   :  { %13 = vsyncpa [#allocation4], 0  ;;  %325 = vmatprep.mubr.msk.bf16.mxu0 %vm74_vm0, %v33_v5  ;;  %v341_v6 = vld [vmem:[%s470_s1 + $0x18] sm:$0xff]   ;;  %v31_v7 = vld [vmem:[%s469_s0 + $0x10] sm:$0xff]  ;;  %vm159_vm1 = vcmask 261120   ;;  %v221_v27 = vlaneseq  ;;  %v242_v57 = vstv %s475_s6  ;;  %vm262_vm2 = vcmask 130112  }
   0x6   :  { %v32_v8 = vld [vmem:[%s469_s0 + $0x18] sm:$0xff]  ;;  %v342_v10 = vld [vmem:[%s472_s3] sm:$0xff]   ;;  %v343_v11 = vld [vmem:[%s472_s3 + $0x8] sm:$0xff]   ;;  %vm269_vm3 = vcmask 195712   ;;  %s368_s23 = smov [#allocation3]   ;;  %vm276_vm4 = vcmask 261312  }
   0x7   :  { %320 = vmatpush3.bf16.msra.mxu0 %v339_v1  ;;  %v34_v9 = vpack.c.bf16 %v32_v8, %v31_v7  ;;  %329 = vmatprep.subr.bf16.mxu1 %v342_v10  ;;  %v295_v12 = vld [vmem:[%s471_s2] ss:$0 sm:$0xff]  ;;  %v222_v28 = vshrl.u32 %v221_v27, 7  ;;  %v252_v54 = vand.u32 127, %v221_v27  ;;  %s287_s24 = sshll.u32 %s368_s23, 4  ;;  %vm279_vm5 = vcmask 253952   ;;  %s288_s24 = int_to_ptr.vmem [resolvable:$true] %s287_s24 }
   0x8   :  { %321 = vmatprep.subr.bf16.mxu0 %v340_v2  ;;  %330 = vmatpush3.bf16.msra.mxu1 %v342_v10  ;;  %v219_v29 = vld [vmem:[%s474_s5] sm:$0x1]  ;;  %s344_s6 = scalar_lea.vmem %s288_s24, 16  ;;  %s348_s25 = scalar_lea.vmem %s288_s24, 32 }
   0x9   :  { %331 = vmatprep.subr.bf16.mxu1 %v343_v11  ;;  %v220_v30 = vunpack.c.l.bf16 %v219_v29  ;;  %v223_v31 = vsub.s32 0, %v222_v28  ;;  %v302_v32 = vld [vmem:[%s473_s4] ss:$0 sm:$0xff]  ;;  %v257_v56 = vadd.s32 4294967288, %v252_v54  ;;  %v264_v58 = vadd.s32 4294967280, %v252_v54  ;;  %p345_p0 = scmp.ne.s32.totalorder %s288_s24, %s344_s6  ;;  %p349_p1 = scmp.lt.s32.totalorder %s288_s24, %s288_s24 }
   0xa   :  { %v271_v60 = vadd.s32 4294967272, %v252_v54  ;;  %v255_v61 = vsub.s32 %v252_v54, %v222_v28  ;;  %p350_p2 = scmp.lt.s32.totalorder %s348_s25, %s344_s6 }
   0xb   :  { %322 = vmatpush3.bf16.msra.mxu0 %v340_v2  ;;  %v224_v36 = vrot.slane %v220_v30, %v223_v31  ;;  %v260_v0 = vsub.s32 %v257_v56, %v222_v28  ;;  %v267_v1 = vsub.s32 %v264_v58, %v222_v28 }
   0xc   :  { %323 = vmatprep.subr.bf16.mxu0 %v341_v6  ;;  %332 = vmatpush3.bf16.msra.mxu1 %v343_v11  ;;  %v274_v4 = vsub.s32 %v271_v60, %v222_v28  ;;  %p351_p3 = por %p350_p2, %p349_p1 }
   0xe   :  { %p352_p4 = pnand %p351_p3, %p345_p0 }
   0xf   :  { %324 = vmatpush3.bf16.msra.mxu0 %v341_v6 }
  0x12   :  { %326 = vmatmul.mubr.msk.bf16.vlgmr.msra.gmra.mrb[0].mxu0 %vm74_vm0, %v34_v9 }
  0xe5   :  { %v327_v13 = vpop.f32.mrb[0].mxu0 }
  0xe6   :  { %v124_v14 = vadd.f32 %v327_v13, %v295_v12  ;;  %v115_v15 = vpop.f32.mrb[1].mxu0 }
  0xe7   :  { %v116_v16 = vadd.f32 %v295_v12, %v115_v15  ;;  %v328_v17 = vpop.f32.mrb[2].mxu0 }
  0xe8   :  { %v127_v18 = vadd.f32 %v328_v17, %v295_v12  ;;  %v118_v19 = vpop.f32.mrb[3].mxu0  ;;  %v132_v21 = vmax.f32 %v124_v14, 0.0 }
  0xe9   :  { %v119_v20 = vadd.f32 %v295_v12, %v118_v19  ;;  %v130_v23 = vmax.f32 %v116_v16, 0.0 }
  0xea   :  { %v133_v22 = vmax.f32 %v127_v18, 0.0 }
  0xeb   :  { %v131_v24 = vmax.f32 %v119_v20, 0.0 }
  0xec   :  { %v135_v25 = vpack.c.bf16 %v133_v22, %v132_v21 }
  0xed   :  { %v134_v26 = vpack.c.bf16 %v131_v24, %v130_v23 }
  0xef   :  { %333 = vmatprep.mubr.msk.bf16.mxu1 %vm159_vm1, %v134_v26 }
  0xf0   :  { %334 = vmatmul.mubr.msk.bf16.vlgmr.msra.gmra.mrb[0].mxu1 %vm159_vm1, %v135_v25 }
 0x1c3   :  { %v335_v33 = vpop.f32.mrb[0].mxu1 }
 0x1c4   :  { %v209_v34 = vadd.f32 %v335_v33, %v302_v32  ;;  %v200_v35 = vpop.f32.mrb[1].mxu1 }
 0x1c5   :  { %v201_v37 = vadd.f32 %v302_v32, %v200_v35  ;;  %v336_v38 = vpop.f32.mrb[2].mxu1 }
 0x1c6   :  { %v217_v39 = vmax.f32 %v209_v34, 0.0  ;;  %v212_v40 = vadd.f32 %v336_v38, %v302_v32  ;;  %v203_v41 = vpop.f32.mrb[3].mxu1 }
 0x1c7   :  { %v215_v42 = vmax.f32 %v201_v37, 0.0  ;;  %v204_v43 = vadd.f32 %v302_v32, %v203_v41 }
 0x1c8   :  { %v218_v44 = vmax.f32 %v212_v40, 0.0  ;;  %v227_v45 = vmul.f32 %v224_v36, %v217_v39 }
 0x1c9   :  { %v216_v46 = vmax.f32 %v204_v43, 0.0  ;;  %v225_v47 = vmul.f32 %v224_v36, %v215_v42 }
 0x1ca   :  { %v235_v48 = vsel %vm159_vm1, %v227_v45, 0.0  ;;  %v228_v49 = vmul.f32 %v224_v36, %v218_v44 }
 0x1cb   :  { %236 = vadd.xlane.f32.xlu1 %v235_v48  ;;  %v229_v50 = vsel %vm159_vm1, %v225_v47, 0.0  ;;  %v226_v51 = vmul.f32 %v224_v36, %v216_v46 }
 0x1cc   :  { %230 = vadd.xlane.f32.xlu0 %v229_v50  ;;  %v238_v52 = vsel %vm159_vm1, %v228_v49, 0.0 }
 0x1cd   :  { %v232_v53 = vsel %vm159_vm1, %v226_v51, 0.0 }
 0x1cf   :  { %239 = vadd.xlane.f32.xlu1 %v238_v52 }
 0x1d0   :  { %233 = vadd.xlane.f32.xlu0 %v232_v53 }
 0x258   :  { %v237_v55 = vpop.xlane.xlu1 %236 }
 0x259   :  { %v231_v59 = vpop.xlane.xlu0 %230  ;;  %v245_v2 = vadd.f32 %v242_v57, %v237_v55 }
 0x25a   :  { %v243_v62 = vadd.f32 %v242_v57, %v231_v59 }
 0x25b   :  { %v268_v9 = vrot.slane %v245_v2, %v267_v1 }
 0x25c   :  { %v240_v63 = vpop.xlane.xlu1 %239  ;;  %v256_v7 = vrot.slane %v243_v62, %v255_v61 }
 0x25d   :  { %v234_v3 = vpop.xlane.xlu0 %233  ;;  %v246_v5 = vadd.f32 %v242_v57, %v240_v63 }
 0x25e   :  { %v244_v6 = vadd.f32 %v242_v57, %v234_v3 }
 0x25f   :  { %v275_v10 = vrot.slane %v246_v5, %v274_v4 }
 0x260   :  { %v261_v8 = vrot.slane %v244_v6, %v260_v0 }
 0x262   :  { %v263_v11 = vsel %vm262_vm2, %v261_v8, %v256_v7 }
 0x263   :  { %v270_v12 = vsel %vm269_vm3, %v268_v9, %v263_v11 }
 0x264   :  { %v277_v13 = vsel %vm276_vm4, %v275_v10, %v270_v12 }
 0x265   :  { %280 = vst.msk [vmem:[#allocation3] sm:$0x1] %vm279_vm5, %v277_v13 }
 0x266   :  { %355 = shalt.err (!%p352_p4)
}
 0x267   :  { %s356_s28 = scalar_lea.hbm %s476_s7, 16 }
 0x268   :  { %p357_p5 = scmp.ne.s32.totalorder %s476_s7, %s356_s28  ;;  %p360_p6 = scmp.lt.u32.totalorder %s356_s28, %s476_s7 }
 0x26a   :  { %p362_p7 = pnand %p360_p6, %p357_p5 }
 0x26c   :  { %365 = shalt.err (!%p362_p7)
}
 0x26d   :  { %290 = dma.vmem_to_hbm [thread:$0]  %s288_s24, 16, %s476_s7, [#allocation4]  }
 0x26e   :  { %366 = dma.done.wait [#allocation4], 16  }
 0x26f   :  { %367 = vsyncadd [#allocation4], 4294967280 }
 0x270   :  { %294 = vsyncpa [#allocation4], 1 }

</bundles_post_ra>
